<compile_context>
chip_gen: v5e
topology: v5e:2x2
jax: 0.10.0
libtpu: 0.0.40
codegen_flags: <defaults>
</compile_context>

<pallas_src>
import functools

import jax
import jax.numpy as jnp
from jax.experimental import pallas as pl
from jax.experimental.pallas import tpu as pltpu

HIDDEN = 64          # output width of every Linear in ItemEncoder
NEG_SLOPE = 0.01     # F.leaky_relu default negative_slope
FOLD = 2             # rows folded per vreg row -> lane width FOLD*HIDDEN = 128
SPLIT_K_MIN = 512    # F_in at/above which layer 1 uses the un-folded (split) path
_VMEM_BUDGET = 32 * 1024 * 1024   # keep tiles comfortably inside every generation


def _leaky_relu(x):
    return jnp.where(x > 0, x, NEG_SLOPE * x)


def _round_up(a, m):
    return pl.cdiv(a, m) * m


def _block_diag2(w):
    """[[w, 0], [0, w]] — one lane-dense matmul then handles two folded rows."""
    k, n = w.shape
    out = jnp.zeros((FOLD * k, FOLD * n), w.dtype)
    return out.at[:k, :n].set(w).at[k:, n:].set(w)


def item_encoder_kernel(x_ref, w1_ref, b1_ref, w2_ref, b2_ref, w3_ref, b3_ref,
                        o_ref, *, precision):
    """3 MXU matmuls (fp32 accumulation) + VPU leaky_relu; all lane-dense (tile,128)."""
    cdt = w2_ref.dtype                         # compute dtype (fp32 or bf16)
    x = x_ref[...].astype(cdt)                 # no-op cast on the fp32 path
    if w1_ref.shape[1] == HIDDEN:
        # Large-F_in path: un-folded first layer (half the MACs of block-diag);
        # two (tile, f_pad) @ (f_pad, 64) matmuls packed back lane-dense.
        k1 = w1_ref.shape[0]
        w1 = w1_ref[...]
        h0 = jnp.dot(x[:, :k1], w1, preferred_element_type=jnp.float32,
                     precision=precision)
        h1 = jnp.dot(x[:, k1:], w1, preferred_element_type=jnp.float32,
                     precision=precision)
        h = jnp.concatenate([h0, h1], axis=-1) + b1_ref[...]
    else:
        h = jnp.dot(x, w1_ref[...], preferred_element_type=jnp.float32,
                    precision=precision) + b1_ref[...]
    h = _leaky_relu(h).astype(cdt)
    h = jnp.dot(h, w2_ref[...], preferred_element_type=jnp.float32,
                precision=precision) + b2_ref[...]
    h = _leaky_relu(h).astype(cdt)
    h = jnp.dot(h, w3_ref[...], preferred_element_type=jnp.float32,
                precision=precision) + b3_ref[...]          # fc3: no activation
    o_ref[...] = h.astype(o_ref.dtype)                      # unmasked (tile,128) store


@functools.cache
def _single_buffer_supported():
    """Probe pl.Buffered(1) (single-buffered constant operands) once; fall back to
    default double-buffering on jax versions that reject it."""
    try:
        def _copy(x_ref, o_ref):
            o_ref[...] = x_ref[...]
        x = jnp.zeros((8, 128), jnp.float32)
        out = pl.pallas_call(
            _copy,
            out_shape=jax.ShapeDtypeStruct((8, 128), jnp.float32),
            grid=(1,),
            in_specs=[pl.BlockSpec((8, 128), lambda i: (0, 0),
                                   pipeline_mode=pl.Buffered(1))],
            out_specs=pl.BlockSpec((8, 128), lambda i: (0, 0)),
        )(x)
        jax.block_until_ready(out)
        return True
    except Exception:      # any rejection -> plain double-buffered BlockSpecs
        return False


@functools.partial(
    jax.jit,
    static_argnames=("f_pad", "tile", "grid", "split_first", "aligned",
                     "compute_dtype", "single_buffer", "vmem_limit"))
def _item_encoder_impl(x, w1, b1, w2, b2, w3, b3, *, f_pad, tile, grid,
                       split_first, aligned, compute_dtype, single_buffer,
                       vmem_limit):
    B, F_in = x.shape
    dt = x.dtype
    rows = pl.cdiv(B, FOLD)                        # folded rows

    # ---- fold the input: (B, F_in) -> (rows, FOLD*f_pad) --------------------
    if aligned:
        x_fold = x.reshape(rows, FOLD * f_pad)     # free row-major reshape, no pad
    else:
        # TODO(synk): ragged shapes still re-materialize the whole padded input;
        # a masked tail block would avoid this extra HBM pass.
        b_pad = rows * FOLD
        x_p = jnp.zeros((b_pad, f_pad), dt).at[:B, :F_in].set(x)
        x_fold = x_p.reshape(rows, FOLD * f_pad)

    # ---- fold the weights (fetched into VMEM once per call) -----------------
    cdt = compute_dtype
    prec = jax.lax.Precision.HIGHEST if cdt == jnp.dtype(jnp.float32) else None
    w1_c = w1.astype(cdt)
    if F_in != f_pad:
        w1_c = jnp.zeros((f_pad, HIDDEN), cdt).at[:F_in].set(w1_c)
    w1_k = w1_c if split_first else _block_diag2(w1_c)   # (f_pad,64) or (2*f_pad,128)
    w2_k = _block_diag2(w2.astype(cdt))                  # (128, 128)
    w3_k = _block_diag2(w3.astype(cdt))                  # (128, 128)
    b1_k = jnp.tile(b1.reshape(1, HIDDEN).astype(jnp.float32), (1, FOLD))  # (1,128)
    b2_k = jnp.tile(b2.reshape(1, HIDDEN).astype(jnp.float32), (1, FOLD))
    b3_k = jnp.tile(b3.reshape(1, HIDDEN).astype(jnp.float32), (1, FOLD))

    def const_spec(arr):
        if single_buffer:   # constant index_map -> one VMEM copy is enough
            return pl.BlockSpec(arr.shape, lambda i: (0, 0),
                                pipeline_mode=pl.Buffered(1))
        return pl.BlockSpec(arr.shape, lambda i: (0, 0))

    out_fold = pl.pallas_call(
        functools.partial(item_encoder_kernel, precision=prec),
        out_shape=jax.ShapeDtypeStruct((rows, FOLD * HIDDEN), dt),
        grid_spec=pltpu.PrefetchScalarGridSpec(
            num_scalar_prefetch=0,
            grid=(grid,),
            in_specs=[
                pl.BlockSpec((tile, FOLD * f_pad), lambda i: (i, 0)),
                const_spec(w1_k), const_spec(b1_k),
                const_spec(w2_k), const_spec(b2_k),
                const_spec(w3_k), const_spec(b3_k),
            ],
            out_specs=pl.BlockSpec((tile, FOLD * HIDDEN), lambda i: (i, 0)),
        ),
        compiler_params=pltpu.CompilerParams(
            dimension_semantics=("parallel",),   # shards the batch grid over v7x's 2 TCs
            vmem_limit_bytes=vmem_limit,
        ),
    )(x_fold, w1_k, b1_k, w2_k, b2_k, w3_k, b3_k)

    # (rows,128) row-major is bit-identical to (2*rows,64); slice only when padded.
    out = out_fold.reshape(rows * FOLD, HIDDEN)
    return out if aligned else out[:B]


def item_encoder(x, params, *, batch_tile=4096, compute_dtype=None):
    """Fused ItemEncoder forward.

    x: (B, in_features).  params: w1,b1,w2,b2,w3,b3 with weights stored as
    (in, out) — the transpose of nn.Linear's (out, in) — so the kernel computes
    x @ W + b directly.
    compute_dtype=None  -> compute in x.dtype with precision=HIGHEST (exact fp32).
    compute_dtype=bf16  -> bf16 MXU passes with fp32 accumulation (v6e/v7x speedup).
    """
    B, F_in = x.shape
    cdt = jnp.dtype(x.dtype if compute_dtype is None else compute_dtype)

    split_first = F_in >= SPLIT_K_MIN
    k_align = FOLD * HIDDEN if split_first else HIDDEN
    f_pad = _round_up(F_in, k_align)
    aligned = (F_in == f_pad) and (B % FOLD == 0)     # no pad copy / output slice
    rows = pl.cdiv(B, FOLD)

    # ---- batch tile: as large as the VMEM budget allows ----------------------
    tile = _round_up(max(min(batch_tile // FOLD, rows), 8), 8)
    single_buffer = _single_buffer_supported()
    x_isz = jnp.dtype(x.dtype).itemsize
    c_isz = cdt.itemsize
    w_copies = 1 if single_buffer else 2
    w1_rows = f_pad if split_first else FOLD * f_pad
    w1_cols = HIDDEN if split_first else FOLD * HIDDEN
    const_bytes = w_copies * ((w1_rows * w1_cols + 2 * (FOLD * HIDDEN) ** 2) * c_isz
                              + 3 * FOLD * HIDDEN * 4)

    def vmem_need(t):   # double-buffered x & out tiles + resident constants
        return (2 * t * FOLD * f_pad * x_isz
                + 2 * t * FOLD * HIDDEN * x_isz
                + const_bytes)

    while tile > 8 and vmem_need(tile) > _VMEM_BUDGET:
        tile = max(8, _round_up(tile // 2, 8))
    # Keep >= 2 grid steps when possible so ("parallel",) can use both v7x TCs.
    if rows >= 16 and pl.cdiv(rows, tile) < 2:
        tile = _round_up(pl.cdiv(rows, 2), 8)
    grid = pl.cdiv(rows, tile)
    vmem_limit = int(min(max(32 * 1024 * 1024, vmem_need(tile) * 3 // 2),
                         64 * 1024 * 1024))

    return _item_encoder_impl(
        x, params["w1"], params["b1"], params["w2"], params["b2"],
        params["w3"], params["b3"],
        f_pad=int(f_pad), tile=int(tile), grid=int(grid),
        split_first=bool(split_first), aligned=bool(aligned),
        compute_dtype=cdt, single_buffer=bool(single_buffer),
        vmem_limit=vmem_limit)


def init_params(key, in_features):
    """Synthetic init matching nn.Linear shapes (weights stored as (in, out))."""
    k1, k2, k3, k4, k5, k6 = jax.random.split(key, 6)

    def uniform(k, shape, fan_in):
        bound = 1.0 / jnp.sqrt(fan_in)
        return jax.random.uniform(k, shape, jnp.float32, -bound, bound)

    return {
        "w1": uniform(k1, (in_features, HIDDEN), in_features),
        "b1": uniform(k2, (1, HIDDEN), in_features),
        "w2": uniform(k3, (HIDDEN, HIDDEN), HIDDEN),
        "b2": uniform(k4, (1, HIDDEN), HIDDEN),
        "w3": uniform(k5, (HIDDEN, HIDDEN), HIDDEN),
        "b3": uniform(k6, (1, HIDDEN), HIDDEN),
    }


def _reference(x, params):
    P = jax.lax.Precision.HIGHEST
    h = jnp.dot(x, params["w1"], precision=P) + params["b1"]
    h = jnp.where(h > 0, h, NEG_SLOPE * h)
    h = jnp.dot(h, params["w2"], precision=P) + params["b2"]
    h = jnp.where(h > 0, h, NEG_SLOPE * h)
    return jnp.dot(h, params["w3"], precision=P) + params["b3"]   # no activation


if __name__ == "__main__":
    key = jax.random.PRNGKey(0)

    # (batch, in_features): ragged/padded path, aligned fast path, split-K path.
    cases = [(10, 32), (64, 128), (32, 640)]
    for idx, (batch, in_features) in enumerate(cases):
        kx, kp = jax.random.split(jax.random.fold_in(key, idx))
        x = jax.random.normal(kx, (batch, in_features), dtype=jnp.float32)
        params = init_params(kp, in_features)

        out = jax.block_until_ready(item_encoder(x, params))
        ref = _reference(x, params)
        assert out.shape == (batch, HIDDEN)
        assert jnp.allclose(out, ref, atol=1e-4, rtol=1e-4), (
            f"fp32 mismatch vs JAX reference for shape {(batch, in_features)}")

        if (batch, in_features) == (64, 128):
            # bf16 compute path (fp32 accumulation) — looser tolerance by construction.
            out_bf16 = jax.block_until_ready(
                item_encoder(x, params, compute_dtype=jnp.bfloat16))
            assert jnp.allclose(out_bf16, ref, atol=5e-2, rtol=5e-2), "bf16 mismatch"

    print("KERNEL_OK")
</pallas_src>

<mosaic_0001>
module attributes {stable_mosaic.version = 11 : i64} {
  func.func @_copy(%arg0: i32, %arg1: memref<8x128xf32, #tpu.memory_space<vmem>>, %arg2: memref<8x128xf32, #tpu.memory_space<vmem>>) attributes {dimension_semantics = [#tpu.dimension_semantics<arbitrary>], iteration_bounds = array<i64: 1>, scalar_prefetch = 0 : i64, scratch_operands = 0 : i64, tpu.core_type = #tpu.core_type<tc>, window_params = [{pipeline_mode = #tpu.pipeline_mode<synchronous>, transform_indices = @transform_0, window_bounds = array<i64: 8, 128>}, {pipeline_mode = #tpu.pipeline_mode<synchronous>, transform_indices = @transform_1, window_bounds = array<i64: 8, 128>}]} {
    %c0 = arith.constant 0 : index
    %c0_0 = arith.constant 0 : index
    %0 = vector.load %arg1[%c0, %c0_0] : memref<8x128xf32, #tpu.memory_space<vmem>>, vector<8x128xf32>
    %c0_1 = arith.constant 0 : index
    %c0_2 = arith.constant 0 : index
    %1 = vector.load %arg2[%c0_1, %c0_2] : memref<8x128xf32, #tpu.memory_space<vmem>>, vector<8x128xf32>
    tpu.vector_store %arg2[%c0_1, %c0_2], %0 {strides = array<i32>} : memref<8x128xf32, #tpu.memory_space<vmem>>, vector<8x128xf32>,
    return
  }
  func.func @transform_0(%arg0: i32) -> (i32, i32) {
    %c0_i32 = arith.constant 0 : i32
    %c0_i32_0 = arith.constant 0 : i32
    %c0_i32_1 = arith.constant 0 : i32
    return %c0_i32, %c0_i32_0 : i32, i32
  }
  func.func @transform_1(%arg0: i32) -> (i32, i32) {
    %c0_i32 = arith.constant 0 : i32
    %c0_i32_0 = arith.constant 0 : i32
    %c0_i32_1 = arith.constant 0 : i32
    return %c0_i32, %c0_i32_0 : i32, i32
  }
}

module attributes {stable_mosaic.version = 11 : i64} {
  func.func @item_encoder_kernel(%arg0: i32, %arg1: memref<8x128xf32, #tpu.memory_space<vmem>>, %arg2: memref<128x128xf32, #tpu.memory_space<vmem>>, %arg3: memref<1x128xf32, #tpu.memory_space<vmem>>, %arg4: memref<128x128xf32, #tpu.memory_space<vmem>>, %arg5: memref<1x128xf32, #tpu.memory_space<vmem>>, %arg6: memref<128x128xf32, #tpu.memory_space<vmem>>, %arg7: memref<1x128xf32, #tpu.memory_space<vmem>>, %arg8: memref<8x128xf32, #tpu.memory_space<vmem>>) attributes {dimension_semantics = [#tpu.dimension_semantics<parallel>], iteration_bounds = array<i64: 1>, scalar_prefetch = 0 : i64, scratch_operands = 0 : i64, tpu.core_type = #tpu.core_type<tc>, window_params = [{transform_indices = @transform_0, window_bounds = array<i64: 8, 128>}, {pipeline_mode = #tpu.pipeline_mode<synchronous>, transform_indices = @transform_1, window_bounds = array<i64: 128, 128>}, {pipeline_mode = #tpu.pipeline_mode<synchronous>, transform_indices = @transform_2, window_bounds = array<i64: 1, 128>}, {pipeline_mode = #tpu.pipeline_mode<synchronous>, transform_indices = @transform_3, window_bounds = array<i64: 128, 128>}, {pipeline_mode = #tpu.pipeline_mode<synchronous>, transform_indices = @transform_4, window_bounds = array<i64: 1, 128>}, {pipeline_mode = #tpu.pipeline_mode<synchronous>, transform_indices = @transform_5, window_bounds = array<i64: 128, 128>}, {pipeline_mode = #tpu.pipeline_mode<synchronous>, transform_indices = @transform_6, window_bounds = array<i64: 1, 128>}, {transform_indices = @transform_7, window_bounds = array<i64: 8, 128>}]} {
    %c0 = arith.constant 0 : index
    %c0_0 = arith.constant 0 : index
    %0 = vector.load %arg1[%c0, %c0_0] : memref<8x128xf32, #tpu.memory_space<vmem>>, vector<8x128xf32>
    %c0_1 = arith.constant 0 : index
    %c0_2 = arith.constant 0 : index
    %1 = vector.load %arg2[%c0_1, %c0_2] : memref<128x128xf32, #tpu.memory_space<vmem>>, vector<128x128xf32>
    %cst = arith.constant dense<0.000000e+00> : vector<8x128xf32>
    %2 = tpu.matmul %0, %1, %cst {dimension_numbers = #tpu.dot_dimension_numbers<[1], [0], [0], [1], [0, 0, 1, 1], [], []>, precision = #tpu.contract_precision<fp32>} : vector<8x128xf32>, vector<128x128xf32>, vector<8x128xf32> -> vector<8x128xf32>
    %c0_3 = arith.constant 0 : index
    %c0_4 = arith.constant 0 : index
    %3 = vector.load %arg3[%c0_3, %c0_4] : memref<1x128xf32, #tpu.memory_space<vmem>>, vector<1x128xf32>
    %4 = vector.broadcast %3 : vector<1x128xf32> to vector<8x128xf32>
    %5 = arith.addf %2, %4 : vector<8x128xf32>
    %cst_5 = arith.constant 0.000000e+00 : f32
    %6 = vector.broadcast %cst_5 : f32 to vector<8x128xf32>
    %7 = arith.cmpf ogt, %5, %6 : vector<8x128xf32>
    %cst_6 = arith.constant 0.00999999977 : f32
    %8 = vector.broadcast %cst_6 : f32 to vector<8x128xf32>
    %9 = arith.mulf %8, %5 : vector<8x128xf32>
    %10 = arith.select %7, %5, %9 : vector<8x128xi1>, vector<8x128xf32>
    %c0_7 = arith.constant 0 : index
    %c0_8 = arith.constant 0 : index
    %11 = vector.load %arg4[%c0_7, %c0_8] : memref<128x128xf32, #tpu.memory_space<vmem>>, vector<128x128xf32>
    %cst_9 = arith.constant dense<0.000000e+00> : vector<8x128xf32>
    %12 = tpu.matmul %10, %11, %cst_9 {dimension_numbers = #tpu.dot_dimension_numbers<[1], [0], [0], [1], [0, 0, 1, 1], [], []>, precision = #tpu.contract_precision<fp32>} : vector<8x128xf32>, vector<128x128xf32>, vector<8x128xf32> -> vector<8x128xf32>
    %c0_10 = arith.constant 0 : index
    %c0_11 = arith.constant 0 : index
    %13 = vector.load %arg5[%c0_10, %c0_11] : memref<1x128xf32, #tpu.memory_space<vmem>>, vector<1x128xf32>
    %14 = vector.broadcast %13 : vector<1x128xf32> to vector<8x128xf32>
    %15 = arith.addf %12, %14 : vector<8x128xf32>
    %cst_12 = arith.constant 0.000000e+00 : f32
    %16 = vector.broadcast %cst_12 : f32 to vector<8x128xf32>
    %17 = arith.cmpf ogt, %15, %16 : vector<8x128xf32>
    %cst_13 = arith.constant 0.00999999977 : f32
    %18 = vector.broadcast %cst_13 : f32 to vector<8x128xf32>
    %19 = arith.mulf %18, %15 : vector<8x128xf32>
    %20 = arith.select %17, %15, %19 : vector<8x128xi1>, vector<8x128xf32>
    %c0_14 = arith.constant 0 : index
    %c0_15 = arith.constant 0 : index
    %21 = vector.load %arg6[%c0_14, %c0_15] : memref<128x128xf32, #tpu.memory_space<vmem>>, vector<128x128xf32>
    %cst_16 = arith.constant dense<0.000000e+00> : vector<8x128xf32>
    %22 = tpu.matmul %20, %21, %cst_16 {dimension_numbers = #tpu.dot_dimension_numbers<[1], [0], [0], [1], [0, 0, 1, 1], [], []>, precision = #tpu.contract_precision<fp32>} : vector<8x128xf32>, vector<128x128xf32>, vector<8x128xf32> -> vector<8x128xf32>
    %c0_17 = arith.constant 0 : index
    %c0_18 = arith.constant 0 : index
    %23 = vector.load %arg7[%c0_17, %c0_18] : memref<1x128xf32, #tpu.memory_space<vmem>>, vector<1x128xf32>
    %24 = vector.broadcast %23 : vector<1x128xf32> to vector<8x128xf32>
    %25 = arith.addf %22, %24 : vector<8x128xf32>
    %c0_19 = arith.constant 0 : index
    %c0_20 = arith.constant 0 : index
    %26 = vector.load %arg8[%c0_19, %c0_20] : memref<8x128xf32, #tpu.memory_space<vmem>>, vector<8x128xf32>
    tpu.vector_store %arg8[%c0_19, %c0_20], %25 {strides = array<i32>} : memref<8x128xf32, #tpu.memory_space<vmem>>, vector<8x128xf32>,
    return
  }
  func.func @transform_0(%arg0: i32) -> (i32, i32) {
    %c0_i32 = arith.constant 0 : i32
    %c0_i32_0 = arith.constant 0 : i32
    return %arg0, %c0_i32 : i32, i32
  }
  func.func @transform_1(%arg0: i32) -> (i32, i32) {
    %c0_i32 = arith.constant 0 : i32
    %c0_i32_0 = arith.constant 0 : i32
    %c0_i32_1 = arith.constant 0 : i32
    return %c0_i32, %c0_i32_0 : i32, i32
  }
  func.func @transform_2(%arg0: i32) -> (i32, i32) {
    %c0_i32 = arith.constant 0 : i32
    %c0_i32_0 = arith.constant 0 : i32
    %c0_i32_1 = arith.constant 0 : i32
    return %c0_i32, %c0_i32_0 : i32, i32
  }
  func.func @transform_3(%arg0: i32) -> (i32, i32) {
    %c0_i32 = arith.constant 0 : i32
    %c0_i32_0 = arith.constant 0 : i32
    %c0_i32_1 = arith.constant 0 : i32
    return %c0_i32, %c0_i32_0 : i32, i32
  }
  func.func @transform_4(%arg0: i32) -> (i32, i32) {
    %c0_i32 = arith.constant 0 : i32
    %c0_i32_0 = arith.constant 0 : i32
    %c0_i32_1 = arith.constant 0 : i32
    return %c0_i32, %c0_i32_0 : i32, i32
  }
  func.func @transform_5(%arg0: i32) -> (i32, i32) {
    %c0_i32 = arith.constant 0 : i32
    %c0_i32_0 = arith.constant 0 : i32
    %c0_i32_1 = arith.constant 0 : i32
    return %c0_i32, %c0_i32_0 : i32, i32
  }
  func.func @transform_6(%arg0: i32) -> (i32, i32) {
    %c0_i32 = arith.constant 0 : i32
    %c0_i32_0 = arith.constant 0 : i32
    %c0_i32_1 = arith.constant 0 : i32
    return %c0_i32, %c0_i32_0 : i32, i32
  }
  func.func @transform_7(%arg0: i32) -> (i32, i32) {
    %c0_i32 = arith.constant 0 : i32
    %c0_i32_0 = arith.constant 0 : i32
    return %arg0, %c0_i32 : i32, i32
  }
}

</mosaic_0001>

<bundles_post_ra>
// kernel: tpu_custom_call.1
= control target key start
LH: loop header
LB: loop body
LE: loop exit
PB: predicated region body
PF: predicated region fallthrough
CT: control target
= control target key end

     0   :  { %6 = vsyncpa [#allocation3], 0  ;;  %s114_s0 = inlined_call_operand.hbm [shape: f32[8,128], index: 0, kind: input, shape index: {}]   ;;  %s115_s1 = inlined_call_operand.hbm [shape: f32[8,128], index: 1, kind: output, shape index: {}]  }
   0x1   :  { %7 = vsyncpa [#allocation4], 0  ;;  %s13_s8 = sshll.u32 %s114_s0, 4  ;;  %s96_s9 = smov [#allocation2]   ;;  %s14_s8 = int_to_ptr.hbm [resolvable:$true] %s13_s8 }
   0x2   :  { %s15_s10 = sshll.u32 %s96_s9, 4  ;;  %s16_s10 = int_to_ptr.vmem [resolvable:$true] %s15_s10 }
   0x3   :  { %18 = dma.hbm_to_vmem [thread:$0]  %s14_s8, 128, %s16_s10, [#allocation3]  }
   0x4   :  { %92 = dma.done.wait [#allocation3], 128  }
   0x5   :  { %93 = vsyncadd [#allocation3], 4294967168  ;;  %s97_s11 = smov [#allocation5]   ;;  %s32_s15 = sshll.u32 %s115_s1, 4  ;;  %v23_v0 = vld [vmem:[#allocation2] sm:$0xff]  ;;  %s33_s15 = int_to_ptr.hbm [resolvable:$true] %s32_s15 }
   0x6   :  { %s30_s12 = sshll.u32 %s97_s11, 4  ;;  %24 = vst [vmem:[#allocation5] sm:$0xff] %v23_v0  ;;  %s31_s12 = int_to_ptr.vmem [resolvable:$true] %s30_s12 }
   0x7   :  { %35 = dma.vmem_to_hbm [thread:$0]  %s31_s12, 128, %s33_s15, [#allocation4]  }
   0x8   :  { %94 = dma.done.wait [#allocation4], 128  }
   0x9   :  { %95 = vsyncadd [#allocation4], 4294967168 }
   0xa   :  { %40 = vsyncpa [#allocation3], 1 }
   0xb   :  { %41 = vsyncpa [#allocation4], 1 }

// kernel: _item_encoder_impl.1
= control target key start
LH: loop header
LB: loop body
LE: loop exit
PB: predicated region body
PF: predicated region fallthrough
CT: control target
= control target key end

     0   :  { %s2001_s1 = inlined_call_operand.vmem [shape: f32[128,128], index: 1, kind: input, shape index: {}]   ;;  %s2002_s2 = inlined_call_operand.vmem [shape: f32[1,128], index: 2, kind: input, shape index: {}]   ;;  %s2003_s0 = inlined_call_operand.vmem [shape: f32[5,128], index: 0, kind: input, shape index: {}]   ;;  %s2004_s3 = inlined_call_operand.vmem [shape: f32[128,128], index: 3, kind: input, shape index: {}]   ;;  %s2005_s5 = inlined_call_operand.vmem [shape: f32[128,128], index: 5, kind: input, shape index: {}]   ;;  %s2006_s4 = inlined_call_operand.vmem [shape: f32[1,128], index: 4, kind: input, shape index: {}]   ;;  %s2007_s6 = inlined_call_operand.vmem [shape: f32[1,128], index: 6, kind: input, shape index: {}]   ;;  %s2008_s7 = inlined_call_operand.vmem [shape: f32[5,128], index: 7, kind: output, shape index: {}]  }
   0x1   :  { %v42_v0 = vld [vmem:[%s2001_s1 + $0x78] sm:$0xff]  ;;  %v41_v1 = vld [vmem:[%s2001_s1 + $0x70] sm:$0xff]  ;;  %v40_v2 = vld [vmem:[%s2001_s1 + $0x68] sm:$0xff] }
   0x2   :  { %v1173_v3 = vand.u32 4294901760, %v42_v0  ;;  %v1175_v4 = vand.u32 4294901760, %v41_v1  ;;  %v1177_v5 = vand.u32 4294901760, %v40_v2  ;;  %v39_v6 = vld [vmem:[%s2001_s1 + $0x60] sm:$0xff]  ;;  %v38_v7 = vld [vmem:[%s2001_s1 + $0x58] sm:$0xff]  ;;  %v37_v8 = vld [vmem:[%s2001_s1 + $0x50] sm:$0xff] }
   0x3   :  { %v1188_v9 = vand.u32 4294901760, %v39_v6  ;;  %v1190_v10 = vand.u32 4294901760, %v38_v7  ;;  %v1192_v11 = vand.u32 4294901760, %v37_v8  ;;  %v36_v12 = vld [vmem:[%s2001_s1 + $0x48] sm:$0xff]  ;;  %v35_v13 = vld [vmem:[%s2001_s1 + $0x40] sm:$0xff]  ;;  %v34_v21 = vld [vmem:[%s2001_s1 + $0x38] sm:$0xff] }
   0x4   :  { %48 = vmatpush.msra.mxu0 %v1173_v3  ;;  %v1202_v14 = vsub.f32 %v42_v0, %v1173_v3  ;;  %v1205_v15 = vsub.f32 %v41_v1, %v1175_v4  ;;  %v1208_v16 = vsub.f32 %v40_v2, %v1177_v5  ;;  %v1210_v17 = vand.u32 4294901760, %v36_v12  ;;  %244 = vmatpush.msra.mxu3 %v1173_v3  ;;  %v33_v34 = vld [vmem:[%s2001_s1 + $0x30] sm:$0xff]  ;;  %v32_v35 = vld [vmem:[%s2001_s1 + $0x28] sm:$0xff]  ;;  %v31_v42 = vld [vmem:[%s2001_s1 + $0x20] sm:$0xff] }
   0x5   :  { %v1214_v18 = vsub.f32 %v39_v6, %v1188_v9  ;;  %v1217_v19 = vsub.f32 %v38_v7, %v1190_v10  ;;  %v1219_v20 = vand.u32 4294901760, %v35_v13  ;;  %v1229_v25 = vsub.f32 %v37_v8, %v1192_v11  ;;  %v30_v47 = vld [vmem:[%s2001_s1 + $0x18] sm:$0xff]  ;;  %v29_v53 = vld [vmem:[%s2001_s1 + $0x10] sm:$0xff]  ;;  %v28_v61 = vld [vmem:[%s2001_s1 + $0x8] sm:$0xff] }
   0x6   :  { %50 = vmatpush.msra.mxu0 %v1175_v4  ;;  %v90_v22 = vand.u32 4294901760, %v1202_v14  ;;  %v96_v23 = vand.u32 4294901760, %v1205_v15  ;;  %v102_v24 = vand.u32 4294901760, %v1208_v16  ;;  %191 = vmatpush.msra.mxu2 %v1202_v14  ;;  %v1235_v28 = vsub.f32 %v36_v12, %v1210_v17  ;;  %v27_v2 = vld [vmem:[%s2001_s1] sm:$0xff] }
   0x7   :  { %v108_v26 = vand.u32 4294901760, %v1214_v18  ;;  %v114_v27 = vand.u32 4294901760, %v1217_v19  ;;  %246 = vmatpush.msra.mxu3 %v1175_v4  ;;  %v1248_v32 = vand.u32 4294901760, %v34_v21  ;;  %v1252_v33 = vsub.f32 %v35_v13, %v1219_v20 }
   0x8   :  { %v91_v29 = vsub.f32 %v1202_v14, %v90_v22  ;;  %52 = vmatpush.msra.mxu0 %v1177_v5  ;;  %v97_v30 = vsub.f32 %v1205_v15, %v96_v23  ;;  %v103_v31 = vsub.f32 %v1208_v16, %v102_v24  ;;  %194 = vmatpush.msra.mxu2 %v1205_v15  ;;  %v120_v39 = vand.u32 4294901760, %v1229_v25  ;;  %v406_v14 = vld [vmem:[%s2004_s3 + $0x78] sm:$0xff]  ;;  %v405_v15 = vld [vmem:[%s2004_s3 + $0x70] sm:$0xff] }
   0x9   :  { %248 = vmatpush.msra.mxu3 %v1177_v5  ;;  %v109_v38 = vsub.f32 %v1214_v18, %v108_v26  ;;  %v115_v40 = vsub.f32 %v1217_v19, %v114_v27  ;;  %v126_v41 = vand.u32 4294901760, %v1235_v28  ;;  %v1276_v44 = vand.u32 4294901760, %v33_v34 }
   0xa   :  { %v92_v36 = vand.u32 4294901760, %v91_v29  ;;  %v98_v37 = vand.u32 4294901760, %v97_v30  ;;  %54 = vmatpush.msra.mxu0 %v1188_v9  ;;  %197 = vmatpush.msra.mxu2 %v1208_v16  ;;  %v104_v43 = vand.u32 4294901760, %v103_v31  ;;  %v1279_v45 = vsub.f32 %v34_v21, %v1248_v32  ;;  %v26_v29 = vld [vmem:[%s2003_s0] sm:$0xff]  ;;  %v404_v16 = vld [vmem:[%s2004_s3 + $0x68] sm:$0xff] }
   0xb   :  { %250 = vmatpush.msra.mxu3 %v1188_v9  ;;  %v1281_v46 = vand.u32 4294901760, %v32_v35  ;;  %v132_v48 = vand.u32 4294901760, %v1252_v33  ;;  %v110_v49 = vand.u32 4294901760, %v109_v38  ;;  %v121_v50 = vsub.f32 %v1229_v25, %v120_v39 }
   0xc   :  { %93 = vmatpush.msra.mxu1 %v92_v36  ;;  %56 = vmatpush.msra.mxu0 %v1190_v10  ;;  %v1294_v51 = vsub.f32 %v33_v34, %v1276_v44  ;;  %v1296_v52 = vand.u32 4294901760, %v31_v42  ;;  %v1301_v54 = vand.u32 4294901760, %v30_v47  ;;  %v116_v55 = vand.u32 4294901760, %v115_v40 }
   0xd   :  { %200 = vmatpush.msra.mxu2 %v1214_v18  ;;  %252 = vmatpush.msra.mxu3 %v1190_v10  ;;  %v127_v56 = vsub.f32 %v1235_v28, %v126_v41  ;;  %v138_v57 = vand.u32 4294901760, %v1279_v45  ;;  %v1311_v58 = vsub.f32 %v32_v35, %v1281_v46  ;;  %v133_v59 = vsub.f32 %v1252_v33, %v132_v48 }
   0xe   :  { %99 = vmatpush.msra.mxu1 %v98_v37  ;;  %58 = vmatpush.msra.mxu0 %v1192_v11  ;;  %v1316_v60 = vand.u32 4294901760, %v29_v53  ;;  %v122_v62 = vand.u32 4294901760, %v121_v50  ;;  %v144_v63 = vand.u32 4294901760, %v1294_v51  ;;  %v1326_v0 = vsub.f32 %v31_v42, %v1296_v52 }
   0xf   :  { %203 = vmatpush.msra.mxu2 %v1217_v19  ;;  %254 = vmatpush.msra.mxu3 %v1192_v11  ;;  %v1329_v1 = vsub.f32 %v30_v47, %v1301_v54  ;;  %v128_v6 = vand.u32 4294901760, %v127_v56  ;;  %v139_v7 = vsub.f32 %v1279_v45, %v138_v57  ;;  %v150_v8 = vand.u32 4294901760, %v1311_v58 }
  0x10   :  { %105 = vmatpush.msra.mxu1 %v104_v43  ;;  %60 = vmatpush.msra.mxu0 %v1210_v17  ;;  %v1341_v12 = vand.u32 4294901760, %v28_v61  ;;  %v134_v13 = vand.u32 4294901760, %v133_v59  ;;  %v1344_v21 = vsub.f32 %v29_v53, %v1316_v60  ;;  %v145_v30 = vsub.f32 %v1294_v51, %v144_v63 }
  0x11   :  { %206 = vmatpush.msra.mxu2 %v1229_v25  ;;  %256 = vmatpush.msra.mxu3 %v1210_v17  ;;  %v156_v31 = vand.u32 4294901760, %v1326_v0  ;;  %v1356_v34 = vand.u32 4294901760, %v27_v2  ;;  %v1358_v35 = vand.u32 4294901760, %v26_v29  ;;  %v162_v36 = vand.u32 4294901760, %v1329_v1 }
  0x12   :  { %111 = vmatpush.msra.mxu1 %v110_v49  ;;  %62 = vmatpush.msra.mxu0 %v1219_v20  ;;  %v140_v37 = vand.u32 4294901760, %v139_v7  ;;  %v151_v38 = vsub.f32 %v1311_v58, %v150_v8  ;;  %v1368_v40 = vsub.f32 %v28_v61, %v1341_v12  ;;  %v146_v43 = vand.u32 4294901760, %v145_v30 }
  0x13   :  { %209 = vmatpush.msra.mxu2 %v1235_v28  ;;  %258 = vmatpush.msra.mxu3 %v1219_v20  ;;  %v80_v42 = vsub.f32 %v26_v29, %v1358_v35  ;;  %v157_v47 = vsub.f32 %v1326_v0, %v156_v31  ;;  %v168_v49 = vand.u32 4294901760, %v1344_v21  ;;  %v1379_v50 = vsub.f32 %v27_v2, %v1356_v34 }
  0x14   :  { %117 = vmatpush.msra.mxu1 %v116_v55  ;;  %64 = vmatpush.msra.mxu0 %v1248_v32  ;;  %v152_v53 = vand.u32 4294901760, %v151_v38  ;;  %v163_v55 = vsub.f32 %v1329_v1, %v162_v36  ;;  %v174_v56 = vand.u32 4294901760, %v1368_v40  ;;  %v1430_v18 = vand.u32 4294901760, %v406_v14 }
  0x15   :  { %212 = vmatpush.msra.mxu2 %v1252_v33  ;;  %260 = vmatpush.msra.mxu3 %v1248_v32  ;;  %v81_v59 = vand.u32 4294901760, %v80_v42  ;;  %v158_v61 = vand.u32 4294901760, %v157_v47  ;;  %v180_v2 = vand.u32 4294901760, %v1379_v50  ;;  %v400_v47 = vld [vmem:[%s2004_s3 + $0x48] sm:$0xff]  ;;  %v398_v33 = vld [vmem:[%s2004_s3 + $0x38] sm:$0xff] }
  0x16   :  { %123 = vmatpush.msra.mxu1 %v122_v62  ;;  %66 = vmatpush.msra.mxu0 %v1276_v44  ;;  %v169_v62 = vsub.f32 %v1344_v21, %v168_v49  ;;  %v175_v7 = vsub.f32 %v1368_v40, %v174_v56 }
  0x17   :  { %215 = vmatpush.msra.mxu2 %v1279_v45  ;;  %262 = vmatpush.msra.mxu3 %v1276_v44  ;;  %v181_v30 = vsub.f32 %v1379_v50, %v180_v2  ;;  %v1533_v45 = vand.u32 4294901760, %v398_v33 }
  0x18   :  { %129 = vmatpush.msra.mxu1 %v128_v6  ;;  %68 = vmatpush.msra.mxu0 %v1281_v46  ;;  %v164_v6 = vand.u32 4294901760, %v163_v55  ;;  %v170_v29 = vand.u32 4294901760, %v169_v62  ;;  %v1462_v55 = vsub.f32 %v406_v14, %v1430_v18  ;;  %v1470_v62 = vand.u32 4294901760, %v400_v47  ;;  %v396_v14 = vld [vmem:[%s2004_s3 + $0x28] sm:$0xff] }
  0x19   :  { %218 = vmatpush.msra.mxu2 %v1294_v51  ;;  %264 = vmatpush.msra.mxu3 %v1281_v46 }
  0x1a   :  { %135 = vmatpush.msra.mxu1 %v134_v13  ;;  %70 = vmatpush.msra.mxu0 %v1296_v52  ;;  %v82_v13 = vsub.f32 %v80_v42, %v81_v59  ;;  %v454_v25 = vand.u32 4294901760, %v1462_v55 }
  0x1b   :  { %221 = vmatpush.msra.mxu2 %v1311_v58  ;;  %266 = vmatpush.msra.mxu3 %v1296_v52 }
  0x1c   :  { %141 = vmatpush.msra.mxu1 %v140_v37  ;;  %72 = vmatpush.msra.mxu0 %v1301_v54  ;;  %v176_v37 = vand.u32 4294901760, %v175_v7  ;;  %v83_v38 = vand.u32 4294901760, %v82_v13 }
  0x1d   :  { %224 = vmatpush.msra.mxu2 %v1326_v0  ;;  %268 = vmatpush.msra.mxu3 %v1301_v54 }
  0x1e   :  { %147 = vmatpush.msra.mxu1 %v146_v43  ;;  %74 = vmatpush.msra.mxu0 %v1316_v60  ;;  %v182_v43 = vand.u32 4294901760, %v181_v30 }
  0x1f   :  { %227 = vmatpush.msra.mxu2 %v1329_v1  ;;  %270 = vmatpush.msra.mxu3 %v1316_v60 }
  0x20   :  { %153 = vmatpush.msra.mxu1 %v152_v53  ;;  %76 = vmatpush.msra.mxu0 %v1341_v12  ;;  %v399_v53 = vld [vmem:[%s2004_s3 + $0x40] sm:$0xff] }
  0x21   :  { %230 = vmatpush.msra.mxu2 %v1344_v21  ;;  %272 = vmatpush.msra.mxu3 %v1341_v12  ;;  %v1485_v13 = vand.u32 4294901760, %v399_v53 }
  0x22   :  { %159 = vmatpush.msra.mxu1 %v158_v61  ;;  %78 = vmatpush.msra.mxu0 %v1356_v34 }
  0x23   :  { %233 = vmatpush.msra.mxu2 %v1368_v40  ;;  %274 = vmatpush.msra.mxu3 %v1356_v34 }
  0x24   :  { %285 = vmatpush.msrb.mxu0 %v90_v22  ;;  %165 = vmatpush.msra.mxu1 %v164_v6  ;;  %v1432_v22 = vand.u32 4294901760, %v405_v15 }
  0x25   :  { %236 = vmatpush.msra.mxu2 %v1379_v50  ;;  %278 = vmatmul.f32.vlgmr.msra.gmra.mxu3 %v81_v59 }
  0x26   :  { %289 = vmatpush.msrb.mxu0 %v96_v23  ;;  %171 = vmatpush.msra.mxu1 %v170_v29  ;;  %v1434_v23 = vand.u32 4294901760, %v404_v16  ;;  %v1465_v59 = vsub.f32 %v405_v15, %v1432_v22 }
  0x27   :  { %239 = vmatmul.f32.vlgmr.msra.gmra.mxu2 %v80_v42  ;;  %84 = vmatmul.f32.vlgmr.msra.gmra.mxu0 %v83_v38 }
  0x28   :  { %293 = vmatpush.msrb.mxu0 %v102_v24  ;;  %177 = vmatpush.msra.mxu1 %v176_v37  ;;  %v403_v24 = vld [vmem:[%s2004_s3 + $0x60] sm:$0xff]  ;;  %v1468_v61 = vsub.f32 %v404_v16, %v1434_v23 }
  0x29   :  { %v1446_v19 = vand.u32 4294901760, %v403_v24  ;;  %412 = vmatpush.msrb.mxu2 %v1430_v18 }
  0x2a   :  { %297 = vmatpush.msrb.mxu0 %v108_v26  ;;  %183 = vmatpush.msra.mxu1 %v182_v43  ;;  %v402_v26 = vld [vmem:[%s2004_s3 + $0x58] sm:$0xff]  ;;  %v466_v7 = vand.u32 4294901760, %v1468_v61  ;;  %v1519_v43 = vsub.f32 %v399_v53, %v1485_v13 }
  0x2b   :  { %185 = vmatmul.f32.vlgmr.msra.gmra.mxu1 %v1358_v35  ;;  %v1473_v6 = vsub.f32 %v403_v24, %v1446_v19  ;;  %414 = vmatpush.msrb.mxu2 %v1432_v22  ;;  %v394_v53 = vld [vmem:[%s2004_s3 + $0x18] sm:$0xff] }
  0x2c   :  { %352 = vmatpush.msrb.mxu1 %v1173_v3  ;;  %301 = vmatpush.msrb.mxu0 %v114_v27  ;;  %v401_v3 = vld [vmem:[%s2004_s3 + $0x50] sm:$0xff]  ;;  %v1448_v27 = vand.u32 4294901760, %v402_v26  ;;  %v467_v37 = vsub.f32 %v1468_v61, %v466_v7  ;;  %v496_v51 = vand.u32 4294901760, %v1519_v43 }
  0x2d   :  { %v1450_v42 = vand.u32 4294901760, %v401_v3  ;;  %v472_v29 = vand.u32 4294901760, %v1473_v6  ;;  %416 = vmatpush.msrb.mxu2 %v1434_v23 }
  0x2e   :  { %354 = vmatpush.msrb.mxu1 %v1175_v4  ;;  %305 = vmatpush.msrb.mxu0 %v120_v39  ;;  %v1477_v4 = vsub.f32 %v402_v26, %v1448_v27  ;;  %v460_v39 = vand.u32 4294901760, %v1465_v59  ;;  %v395_v26 = vld [vmem:[%s2004_s3 + $0x20] sm:$0xff]  ;;  %v497_v0 = vsub.f32 %v1519_v43, %v496_v51 }
  0x2f   :  { %v1490_v30 = vsub.f32 %v401_v3, %v1450_v42  ;;  %v473_v16 = vsub.f32 %v1473_v6, %v472_v29  ;;  %418 = vmatpush.msrb.mxu2 %v1446_v19  ;;  %v468_v3 = vand.u32 4294901760, %v467_v37  ;;  %v1563_v58 = vand.u32 4294901760, %v395_v26  ;;  %v393_v37 = vld [vmem:[%s2004_s3 + $0x10] sm:$0xff] }
  0x30   :  { %356 = vmatpush.msrb.mxu1 %v1177_v5  ;;  %309 = vmatpush.msrb.mxu0 %v126_v41  ;;  %v455_v5 = vsub.f32 %v1462_v55, %v454_v25  ;;  %v461_v28 = vsub.f32 %v1465_v59, %v460_v39  ;;  %v1502_v41 = vsub.f32 %v400_v47, %v1470_v62  ;;  %v498_v21 = vand.u32 4294901760, %v497_v0 }
  0x31   :  { %v484_v24 = vand.u32 4294901760, %v1490_v30  ;;  %420 = vmatpush.msrb.mxu2 %v1448_v27 }
  0x32   :  { %358 = vmatpush.msrb.mxu1 %v1188_v9  ;;  %313 = vmatpush.msrb.mxu0 %v132_v48  ;;  %v478_v9 = vand.u32 4294901760, %v1477_v4  ;;  %v397_v48 = vld [vmem:[%s2004_s3 + $0x30] sm:$0xff]  ;;  %v456_v38 = vand.u32 4294901760, %v455_v5  ;;  %v462_v15 = vand.u32 4294901760, %v461_v28  ;;  %v474_v5 = vand.u32 4294901760, %v473_v16 }
  0x33   :  { %v485_v28 = vsub.f32 %v1490_v30, %v484_v24  ;;  %422 = vmatpush.msrb.mxu2 %v1450_v42  ;;  %v1593_v16 = vsub.f32 %v395_v26, %v1563_v58 }
  0x34   :  { %360 = vmatpush.msrb.mxu1 %v1190_v10  ;;  %317 = vmatpush.msrb.mxu0 %v138_v57  ;;  %v490_v10 = vand.u32 4294901760, %v1502_v41  ;;  %v1535_v57 = vand.u32 4294901760, %v397_v48  ;;  %v479_v47 = vsub.f32 %v1477_v4, %v478_v9 }
  0x35   :  { %457 = vmatpush.msrb.mxu3 %v456_v38  ;;  %424 = vmatpush.msrb.mxu2 %v1470_v62 }
  0x36   :  { %362 = vmatpush.msrb.mxu1 %v1192_v11  ;;  %321 = vmatpush.msrb.mxu0 %v144_v63  ;;  %v1544_v11 = vand.u32 4294901760, %v396_v14  ;;  %v1551_v63 = vsub.f32 %v398_v33, %v1533_v45  ;;  %v480_v33 = vand.u32 4294901760, %v479_v47 }
  0x37   :  { %463 = vmatpush.msrb.mxu3 %v462_v15  ;;  %v486_v15 = vand.u32 4294901760, %v485_v28  ;;  %426 = vmatpush.msrb.mxu2 %v1485_v13 }
  0x38   :  { %364 = vmatpush.msrb.mxu1 %v1210_v17  ;;  %325 = vmatpush.msrb.mxu0 %v150_v8  ;;  %v1561_v17 = vsub.f32 %v397_v48, %v1535_v57  ;;  %v491_v8 = vsub.f32 %v1502_v41, %v490_v10  ;;  %v502_v48 = vand.u32 4294901760, %v1551_v63  ;;  %v1577_v38 = vsub.f32 %v396_v14, %v1544_v11 }
  0x39   :  { %469 = vmatpush.msrb.mxu3 %v468_v3  ;;  %428 = vmatpush.msrb.mxu2 %v1533_v45 }
  0x3a   :  { %366 = vmatpush.msrb.mxu1 %v1219_v20  ;;  %329 = vmatpush.msrb.mxu0 %v156_v31  ;;  %v1579_v20 = vand.u32 4294901760, %v394_v53  ;;  %v392_v31 = vld [vmem:[%s2004_s3 + $0x8] sm:$0xff]  ;;  %v508_v14 = vand.u32 4294901760, %v1561_v17  ;;  %v492_v1 = vand.u32 4294901760, %v491_v8  ;;  %v503_v3 = vsub.f32 %v1551_v63, %v502_v48 }
  0x3b   :  { %475 = vmatpush.msrb.mxu3 %v474_v5  ;;  %v514_v26 = vand.u32 4294901760, %v1577_v38  ;;  %v520_v5 = vand.u32 4294901760, %v1593_v16  ;;  %430 = vmatpush.msrb.mxu2 %v1535_v57 }
  0x3c   :  { %368 = vmatpush.msrb.mxu1 %v1248_v32  ;;  %333 = vmatpush.msrb.mxu0 %v162_v36  ;;  %v1595_v32 = vand.u32 4294901760, %v393_v37  ;;  %v391_v36 = vld [vmem:[%s2004_s3] sm:$0xff]  ;;  %v1609_v47 = vsub.f32 %v394_v53, %v1579_v20 }
  0x3d   :  { %481 = vmatpush.msrb.mxu3 %v480_v33  ;;  %v1624_v28 = vand.u32 4294901760, %v391_v36  ;;  %v515_v40 = vsub.f32 %v1577_v38, %v514_v26  ;;  %v521_v50 = vsub.f32 %v1593_v16, %v520_v5  ;;  %432 = vmatpush.msrb.mxu2 %v1544_v11 }
  0x3e   :  { %370 = vmatpush.msrb.mxu1 %v1276_v44  ;;  %337 = vmatpush.msrb.mxu0 %v168_v49  ;;  %v1611_v44 = vand.u32 4294901760, %v392_v31  ;;  %v509_v49 = vsub.f32 %v1561_v17, %v508_v14  ;;  %v1622_v53 = vsub.f32 %v393_v37, %v1595_v32 }
  0x3f   :  { %487 = vmatpush.msrb.mxu3 %v486_v15  ;;  %v1645_v37 = vsub.f32 %v391_v36, %v1624_v28  ;;  %434 = vmatpush.msrb.mxu2 %v1563_v58 }
  0x40   :  { %372 = vmatpush.msrb.mxu1 %v1281_v46  ;;  %341 = vmatpush.msrb.mxu0 %v174_v56  ;;  %v504_v46 = vand.u32 4294901760, %v503_v3  ;;  %v526_v56 = vand.u32 4294901760, %v1609_v47  ;;  %v1635_v8 = vsub.f32 %v392_v31, %v1611_v44  ;;  %v522_v31 = vand.u32 4294901760, %v521_v50 }
  0x41   :  { %493 = vmatpush.msrb.mxu3 %v492_v1  ;;  %v544_v15 = vand.u32 4294901760, %v1645_v37  ;;  %436 = vmatpush.msrb.mxu2 %v1579_v20 }
  0x42   :  { %374 = vmatpush.msrb.mxu1 %v1296_v52  ;;  %345 = vmatpush.msrb.mxu0 %v180_v2  ;;  %v510_v52 = vand.u32 4294901760, %v509_v49  ;;  %v532_v2 = vand.u32 4294901760, %v1622_v53  ;;  %v527_v33 = vsub.f32 %v1609_v47, %v526_v56  ;;  %v538_v0 = vand.u32 4294901760, %v1635_v8 }
  0x43   :  { %347 = vmatmul.f32.vlgmr.msrb.gmra.mxu0 %v1358_v35  ;;  %499 = vmatpush.msrb.mxu3 %v498_v21 }
  0x44   :  { %376 = vmatpush.msrb.mxu1 %v1301_v54  ;;  %555 = vmatpush.msra.mxu0 %v1462_v55  ;;  %v516_v54 = vand.u32 4294901760, %v515_v40  ;;  %v539_v1 = vsub.f32 %v1635_v8, %v538_v0  ;;  %v762_v40 = vld [vmem:[%s2005_s5 + $0x38] sm:$0xff] }
  0x45   :  { %505 = vmatpush.msrb.mxu3 %v504_v46  ;;  %438 = vmatpush.msrb.mxu2 %v1595_v32 }
  0x46   :  { %378 = vmatpush.msrb.mxu1 %v1316_v60  ;;  %558 = vmatpush.msra.mxu0 %v1465_v59  ;;  %v533_v60 = vsub.f32 %v1622_v53, %v532_v2 }
  0x47   :  { %511 = vmatpush.msrb.mxu3 %v510_v52  ;;  %440 = vmatpush.msrb.mxu2 %v1611_v44 }
  0x48   :  { %380 = vmatpush.msrb.mxu1 %v1341_v12  ;;  %561 = vmatpush.msra.mxu0 %v1468_v61  ;;  %v528_v12 = vand.u32 4294901760, %v527_v33  ;;  %v534_v36 = vand.u32 4294901760, %v533_v60  ;;  %v770_v61 = vld [vmem:[%s2005_s5 + $0x78] sm:$0xff] }
  0x49   :  { %517 = vmatpush.msrb.mxu3 %v516_v54  ;;  %442 = vmatpush.msrb.mxu2 %v1624_v28 }
  0x4a   :  { %382 = vmatpush.msrb.mxu1 %v1356_v34  ;;  %564 = vmatpush.msra.mxu0 %v1473_v6  ;;  %v545_v34 = vsub.f32 %v1645_v37, %v544_v15  ;;  %v768_v6 = vld [vmem:[%s2005_s5 + $0x68] sm:$0xff] }
  0x4b   :  { %384 = vmatmul.f32.vlgmr.msrb.gmra.mxu1 %v1358_v35  ;;  %523 = vmatpush.msrb.mxu3 %v522_v31  ;;  %v540_v35 = vand.u32 4294901760, %v539_v1 }
  0x4c   :  { %608 = vmatpush.msra.mxu1 %v1430_v18  ;;  %567 = vmatpush.msra.mxu0 %v1477_v4  ;;  %v546_v3 = vand.u32 4294901760, %v545_v34 }
  0x4d   :  { %529 = vmatpush.msrb.mxu3 %v528_v12  ;;  %649 = vmatpush.msra.mxu2 %v454_v25  ;;  %v1761_v25 = vand.u32 4294901760, %v770_v61 }
  0x4e   :  { %610 = vmatpush.msra.mxu1 %v1432_v22  ;;  %570 = vmatpush.msra.mxu0 %v1490_v30  ;;  %v765_v30 = vld [vmem:[%s2005_s5 + $0x50] sm:$0xff] }
  0x4f   :  { %535 = vmatpush.msrb.mxu3 %v534_v36  ;;  %653 = vmatpush.msra.mxu2 %v460_v39 }
  0x50   :  { %612 = vmatpush.msra.mxu1 %v1434_v23  ;;  %573 = vmatpush.msra.mxu0 %v1502_v41 }
  0x51   :  { %541 = vmatpush.msrb.mxu3 %v540_v35  ;;  %657 = vmatpush.msra.mxu2 %v466_v7  ;;  %v1765_v7 = vand.u32 4294901760, %v768_v6 }
  0x52   :  { %614 = vmatpush.msra.mxu1 %v1446_v19  ;;  %576 = vmatpush.msra.mxu0 %v1519_v43 }
  0x53   :  { %547 = vmatpush.msrb.mxu3 %v546_v3  ;;  %661 = vmatpush.msra.mxu2 %v472_v29  ;;  %v766_v29 = vld [vmem:[%s2005_s5 + $0x58] sm:$0xff] }
  0x54   :  { %616 = vmatpush.msra.mxu1 %v1448_v27  ;;  %579 = vmatpush.msra.mxu0 %v1551_v63  ;;  %v1778_v43 = vand.u32 4294901760, %v766_v29 }
  0x55   :  { %716 = vmatpush.msra.mxu3 %v1430_v18  ;;  %665 = vmatpush.msra.mxu2 %v478_v9  ;;  %v1121_v18 = vld [vmem:[%s2002_s2] ss:$0 sm:$0xff] }
  0x56   :  { %618 = vmatpush.msra.mxu1 %v1450_v42  ;;  %582 = vmatpush.msra.mxu0 %v1561_v17 }
  0x57   :  { %718 = vmatpush.msra.mxu3 %v1432_v22  ;;  %669 = vmatpush.msra.mxu2 %v484_v24  ;;  %v1780_v24 = vand.u32 4294901760, %v765_v30 }
  0x58   :  { %620 = vmatpush.msra.mxu1 %v1470_v62  ;;  %585 = vmatpush.msra.mxu0 %v1577_v38 }
  0x59   :  { %720 = vmatpush.msra.mxu3 %v1434_v23  ;;  %673 = vmatpush.msra.mxu2 %v490_v10  ;;  %v764_v10 = vld [vmem:[%s2005_s5 + $0x48] sm:$0xff] }
  0x5a   :  { %622 = vmatpush.msra.mxu1 %v1485_v13  ;;  %588 = vmatpush.msra.mxu0 %v1593_v16  ;;  %v1798_v63 = vand.u32 4294901760, %v764_v10 }
  0x5b   :  { %722 = vmatpush.msra.mxu3 %v1446_v19  ;;  %677 = vmatpush.msra.mxu2 %v496_v51  ;;  %v1795_v51 = vsub.f32 %v768_v6, %v1765_v7 }
  0x5c   :  { %624 = vmatpush.msra.mxu1 %v1533_v45  ;;  %591 = vmatpush.msra.mxu0 %v1609_v47 }
  0x5d   :  { %724 = vmatpush.msra.mxu3 %v1448_v27  ;;  %681 = vmatpush.msra.mxu2 %v502_v48  ;;  %v1807_v48 = vsub.f32 %v765_v30, %v1780_v24 }
  0x5e   :  { %626 = vmatpush.msra.mxu1 %v1535_v57  ;;  %594 = vmatpush.msra.mxu0 %v1622_v53 }
  0x5f   :  { %726 = vmatpush.msra.mxu3 %v1450_v42  ;;  %685 = vmatpush.msra.mxu2 %v508_v14 }
  0x60   :  { %628 = vmatpush.msra.mxu1 %v1544_v11  ;;  %597 = vmatpush.msra.mxu0 %v1635_v8 }
  0x61   :  { %728 = vmatpush.msra.mxu3 %v1470_v62  ;;  %689 = vmatpush.msra.mxu2 %v514_v26  ;;  %v769_v62 = vld [vmem:[%s2005_s5 + $0x70] sm:$0xff] }
  0x62   :  { %630 = vmatpush.msra.mxu1 %v1563_v58  ;;  %600 = vmatpush.msra.mxu0 %v1645_v37  ;;  %v1763_v39 = vand.u32 4294901760, %v769_v62  ;;  %v760_v37 = vld [vmem:[%s2005_s5 + $0x28] sm:$0xff] }
  0x63   :  { %730 = vmatpush.msra.mxu3 %v1485_v13  ;;  %693 = vmatpush.msra.mxu2 %v520_v5  ;;  %v767_v13 = vld [vmem:[%s2005_s5 + $0x60] sm:$0xff]  ;;  %v1863_v34 = vand.u32 4294901760, %v760_v37 }
  0x64   :  { %632 = vmatpush.msra.mxu1 %v1579_v20  ;;  %v1776_v9 = vand.u32 4294901760, %v767_v13  ;;  %776 = vmatpush.msrb.mxu0 %v1761_v25 }
  0x65   :  { %732 = vmatpush.msra.mxu3 %v1533_v45  ;;  %697 = vmatpush.msra.mxu2 %v526_v56  ;;  %v763_v45 = vld [vmem:[%s2005_s5 + $0x40] sm:$0xff] }
  0x66   :  { %634 = vmatpush.msra.mxu1 %v1595_v32  ;;  %v1801_v17 = vsub.f32 %v767_v13, %v1776_v9  ;;  %v1809_v38 = vand.u32 4294901760, %v763_v45  ;;  %778 = vmatpush.msrb.mxu0 %v1763_v39 }
  0x67   :  { %734 = vmatpush.msra.mxu3 %v1535_v57  ;;  %701 = vmatpush.msra.mxu2 %v532_v2  ;;  %v1789_v57 = vsub.f32 %v770_v61, %v1761_v25  ;;  %v761_v2 = vld [vmem:[%s2005_s5 + $0x30] sm:$0xff] }
  0x68   :  { %636 = vmatpush.msra.mxu1 %v1611_v44  ;;  %v836_v26 = vand.u32 4294901760, %v1801_v17  ;;  %780 = vmatpush.msrb.mxu0 %v1765_v7  ;;  %v1832_v46 = vsub.f32 %v763_v45, %v1809_v38  ;;  %v1861_v36 = vand.u32 4294901760, %v761_v2 }
  0x69   :  { %736 = vmatpush.msra.mxu3 %v1544_v11  ;;  %705 = vmatpush.msra.mxu2 %v538_v0  ;;  %v1792_v11 = vsub.f32 %v769_v62, %v1763_v39  ;;  %v818_v14 = vand.u32 4294901760, %v1789_v57  ;;  %v759_v0 = vld [vmem:[%s2005_s5 + $0x20] sm:$0xff] }
  0x6a   :  { %638 = vmatpush.msra.mxu1 %v1624_v28  ;;  %v837_v50 = vsub.f32 %v1801_v17, %v836_v26  ;;  %782 = vmatpush.msrb.mxu0 %v1776_v9  ;;  %v860_v1 = vand.u32 4294901760, %v1832_v46 }
  0x6b   :  { %738 = vmatpush.msra.mxu3 %v1563_v58  ;;  %709 = vmatpush.msra.mxu2 %v544_v15  ;;  %v1804_v58 = vsub.f32 %v766_v29, %v1778_v43  ;;  %v824_v16 = vand.u32 4294901760, %v1792_v11  ;;  %v819_v21 = vsub.f32 %v1789_v57, %v818_v14  ;;  %v1855_v15 = vand.u32 4294901760, %v762_v40 }
  0x6c   :  { %784 = vmatpush.msrb.mxu0 %v1778_v43  ;;  %v838_v3 = vand.u32 4294901760, %v837_v50  ;;  %v861_v6 = vsub.f32 %v1832_v46, %v860_v1 }
  0x6d   :  { %740 = vmatpush.msra.mxu3 %v1579_v20  ;;  %v842_v47 = vand.u32 4294901760, %v1804_v58  ;;  %v825_v49 = vsub.f32 %v1792_v11, %v824_v16  ;;  %v820_v8 = vand.u32 4294901760, %v819_v21 }
  0x6e   :  { %786 = vmatpush.msrb.mxu0 %v1780_v24 }
  0x6f   :  { %742 = vmatpush.msra.mxu3 %v1595_v32  ;;  %v830_v32 = vand.u32 4294901760, %v1795_v51  ;;  %v826_v52 = vand.u32 4294901760, %v825_v49  ;;  %v843_v54 = vsub.f32 %v1804_v58, %v842_v47  ;;  %821 = vmatpush.msrb.mxu1 %v820_v8 }
  0x70   :  { %788 = vmatpush.msrb.mxu0 %v1798_v63 }
  0x71   :  { %744 = vmatpush.msra.mxu3 %v1611_v44  ;;  %v1818_v44 = vsub.f32 %v764_v10, %v1798_v63  ;;  %v831_v5 = vsub.f32 %v1795_v51, %v830_v32  ;;  %827 = vmatpush.msrb.mxu1 %v826_v52 }
  0x72   :  { %790 = vmatpush.msrb.mxu0 %v1809_v38 }
  0x73   :  { %746 = vmatpush.msra.mxu3 %v1624_v28  ;;  %v848_v28 = vand.u32 4294901760, %v1807_v48  ;;  %v854_v33 = vand.u32 4294901760, %v1818_v44  ;;  %v832_v60 = vand.u32 4294901760, %v831_v5 }
  0x74   :  { %792 = vmatpush.msrb.mxu0 %v1855_v15 }
  0x75   :  { %v849_v12 = vsub.f32 %v1807_v48, %v848_v28  ;;  %833 = vmatpush.msrb.mxu1 %v832_v60  ;;  %v756_v60 = vld [vmem:[%s2005_s5 + $0x8] sm:$0xff] }
  0x76   :  { %794 = vmatpush.msrb.mxu0 %v1861_v36 }
  0x77   :  { %839 = vmatpush.msrb.mxu1 %v838_v3  ;;  %v850_v62 = vand.u32 4294901760, %v849_v12  ;;  %v803_v3 = vand.u32 4294901760, %v756_v60 }
  0x78   :  { %796 = vmatpush.msrb.mxu0 %v1863_v34 }
  0xa4   :  { %v85_v22 = vpop.f32.mrf.mxu0 }
  0xa5   :  { %v86_v23 = vadd.f32 %v1121_v18, %v85_v22  ;;  %v1866_v18 = vsub.f32 %v762_v40, %v1855_v15  ;;  %v1869_v22 = vand.u32 4294901760, %v759_v0 }
  0xa7   :  { %v1888_v13 = vsub.f32 %v759_v0, %v1869_v22  ;;  %798 = vmatpush.msrb.mxu0 %v1869_v22 }
  0xa8   :  { %v186_v19 = vpop.f32.mrf.mxu1  ;;  %v279_v59 = vpop.f32.mrf.mxu3 }
  0xa9   :  { %v187_v27 = vadd.f32 %v186_v19, %v86_v23  ;;  %v1872_v19 = vsub.f32 %v761_v2, %v1861_v36  ;;  %v884_v49 = vand.u32 4294901760, %v1888_v13  ;;  %v758_v2 = vld [vmem:[%s2005_s5 + $0x18] sm:$0xff] }
  0xaa   :  { %v240_v42 = vpop.f32.mrf.mxu2 }
  0xab   :  { %v241_v55 = vadd.f32 %v240_v42, %v187_v27  ;;  %v844_v27 = vand.u32 4294901760, %v843_v54  ;;  %v855_v42 = vsub.f32 %v1818_v44, %v854_v33  ;;  %v885_v8 = vsub.f32 %v1888_v13, %v884_v49  ;;  %v757_v54 = vld [vmem:[%s2005_s5 + $0x10] sm:$0xff] }
  0xad   :  { %v280_v4 = vadd.f32 %v279_v59, %v241_v55  ;;  %v866_v55 = vand.u32 4294901760, %v1866_v18  ;;  %v1880_v59 = vsub.f32 %v760_v37, %v1863_v34  ;;  %845 = vmatpush.msrb.mxu1 %v844_v27  ;;  %v856_v30 = vand.u32 4294901760, %v855_v42 }
  0xae   :  { %v886_v50 = vand.u32 4294901760, %v885_v8  ;;  %v1935_v37 = vand.u32 4294901760, %v758_v2 }
  0xaf   :  { %v878_v10 = vand.u32 4294901760, %v1880_v59  ;;  %851 = vmatpush.msrb.mxu1 %v850_v62 }
  0xb0   :  { %v889_v0 = vsub.f32 %v758_v2, %v1935_v37  ;;  %800 = vmatpush.msrb.mxu0 %v1935_v37 }
  0xb1   :  { %857 = vmatpush.msrb.mxu1 %v856_v30  ;;  %v879_v40 = vsub.f32 %v1880_v59, %v878_v10 }
  0xb2   :  { %v890_v12 = vand.u32 4294901760, %v889_v0 }
  0xb3   :  { %v880_v52 = vand.u32 4294901760, %v879_v40 }
  0xb4   :  { %v891_v27 = vsub.f32 %v889_v0, %v890_v12 }
  0xc0   :  { %v348_v41 = vpop.f32.mrf.mxu0 }
  0xc1   :  { %v349_v20 = vadd.f32 %v348_v41, %v280_v4  ;;  %v872_v4 = vand.u32 4294901760, %v1872_v19  ;;  %v867_v41 = vsub.f32 %v1866_v18, %v866_v55 }
  0xc3   :  { %v873_v21 = vsub.f32 %v1872_v19, %v872_v4 }
  0xc8   :  { %v385_v53 = vpop.f32.mrf.mxu1 }
  0xc9   :  { %v386_v56 = vadd.f32 %v385_v53, %v349_v20  ;;  %v862_v20 = vand.u32 4294901760, %v861_v6  ;;  %v868_v53 = vand.u32 4294901760, %v867_v41  ;;  %v892_v6 = vand.u32 4294901760, %v891_v27 }
  0xcb   :  { %vm388_vm0 = vcmp.gt.f32.partialorder %v386_v56, 0.0  ;;  %v389_v31 = vmul.f32 0.01, %v386_v56  ;;  %863 = vmatpush.msrb.mxu1 %v862_v20 }
  0xcd   :  { %v390_v35 = vsel %vm388_vm0, %v386_v56, %v389_v31  ;;  %v874_v56 = vand.u32 4294901760, %v873_v21  ;;  %869 = vmatpush.msrb.mxu1 %v868_v53  ;;  %v1941_v31 = vand.u32 4294901760, %v757_v54 }
  0xce   :  { %v443_v23 = vand.u32 4294901760, %v390_v35 }
  0xcf   :  { %875 = vmatpush.msrb.mxu1 %v874_v56  ;;  %802 = vmatpush.msrb.mxu0 %v1941_v31 }
  0xd0   :  { %v444_v61 = vsub.f32 %v390_v35, %v443_v23  ;;  %549 = vmatmul.f32.vlgmr.msrb.gmra.mxu3 %v443_v23  ;;  %v895_v35 = vsub.f32 %v757_v54, %v1941_v31 }
  0xd1   :  { %972 = vmatpush.msrb.mxu3 %v1761_v25  ;;  %881 = vmatpush.msrb.mxu1 %v880_v52 }
  0xd2   :  { %603 = vmatmul.f32.vlgmr.msra.gmra.mxu0 %v444_v61  ;;  %v445_v29 = vand.u32 4294901760, %v444_v61  ;;  %v896_v42 = vand.u32 4294901760, %v895_v35 }
  0xd3   :  { %974 = vmatpush.msrb.mxu3 %v1763_v39  ;;  %887 = vmatpush.msrb.mxu1 %v886_v50 }
  0xd4   :  { %642 = vmatmul.f32.vlgmr.msra.gmra.mxu1 %v445_v29  ;;  %v446_v45 = vsub.f32 %v444_v61, %v445_v29  ;;  %v901_v61 = vsub.f32 %v756_v60, %v803_v3  ;;  %804 = vmatpush.msrb.mxu0 %v803_v3  ;;  %v897_v29 = vsub.f32 %v895_v35, %v896_v42 }
  0xd5   :  { %976 = vmatpush.msrb.mxu3 %v1765_v7  ;;  %893 = vmatpush.msrb.mxu1 %v892_v6 }
  0xd6   :  { %v447_v5 = vand.u32 4294901760, %v446_v45  ;;  %v902_v30 = vand.u32 4294901760, %v901_v61  ;;  %v898_v45 = vand.u32 4294901760, %v897_v29 }
  0xd7   :  { %978 = vmatpush.msrb.mxu3 %v1776_v9 }
  0xd8   :  { %448 = vmatmul.f32.vlgmr.msrb.gmra.mxu2 %v447_v5  ;;  %748 = vmatmul.f32.vlgmr.msra.gmra.mxu3 %v443_v23  ;;  %v903_v20 = vsub.f32 %v901_v61, %v902_v30 }
  0xd9   :  { %919 = vmatpush.msrb.mxu2 %v1789_v57  ;;  %980 = vmatpush.msrb.mxu3 %v1778_v43 }
  0xda   :  { %899 = vmatpush.msrb.mxu1 %v898_v45  ;;  %v904_v5 = vand.u32 4294901760, %v903_v20 }
  0xdb   :  { %922 = vmatpush.msrb.mxu2 %v1792_v11  ;;  %982 = vmatpush.msrb.mxu3 %v1780_v24 }
  0xdc   :  { %905 = vmatpush.msrb.mxu1 %v904_v5 }
  0xdd   :  { %925 = vmatpush.msrb.mxu2 %v1795_v51  ;;  %984 = vmatpush.msrb.mxu3 %v1798_v63 }
  0xdf   :  { %928 = vmatpush.msrb.mxu2 %v1801_v17  ;;  %986 = vmatpush.msrb.mxu3 %v1809_v38 }
  0xe0   :  { %711 = vmatmul.f32.vlgmr.msra.gmra.mxu2 %v443_v23  ;;  %v755_v23 = vld [vmem:[%s2005_s5] sm:$0xff] }
  0xe1   :  { %931 = vmatpush.msrb.mxu2 %v1804_v58  ;;  %988 = vmatpush.msrb.mxu3 %v1855_v15  ;;  %v805_v62 = vand.u32 4294901760, %v755_v23 }
  0xe3   :  { %934 = vmatpush.msrb.mxu2 %v1807_v48  ;;  %990 = vmatpush.msrb.mxu3 %v1861_v36  ;;  %v907_v41 = vsub.f32 %v755_v23, %v805_v62 }
  0xe4   :  { %806 = vmatpush.msrb.mxu0 %v805_v62 }
  0xe5   :  { %937 = vmatpush.msrb.mxu2 %v1818_v44  ;;  %992 = vmatpush.msrb.mxu3 %v1863_v34  ;;  %v908_v21 = vand.u32 4294901760, %v907_v41 }
  0xe6   :  { %1013 = vmatpush.msra.mxu0 %v818_v14 }
  0xe7   :  { %940 = vmatpush.msrb.mxu2 %v1832_v46  ;;  %994 = vmatpush.msrb.mxu3 %v1869_v22  ;;  %v909_v53 = vsub.f32 %v907_v41, %v908_v21 }
  0xe8   :  { %1017 = vmatpush.msra.mxu0 %v824_v16 }
  0xe9   :  { %943 = vmatpush.msrb.mxu2 %v1866_v18  ;;  %996 = vmatpush.msrb.mxu3 %v1935_v37  ;;  %v910_v40 = vand.u32 4294901760, %v909_v53 }
  0xea   :  { %1021 = vmatpush.msra.mxu0 %v830_v32 }
  0xeb   :  { %946 = vmatpush.msrb.mxu2 %v1872_v19  ;;  %998 = vmatpush.msrb.mxu3 %v1941_v31 }
  0xec   :  { %1025 = vmatpush.msra.mxu0 %v836_v26  ;;  %911 = vmatpush.msrb.mxu1 %v910_v40 }
  0xed   :  { %949 = vmatpush.msrb.mxu2 %v1880_v59  ;;  %1000 = vmatpush.msrb.mxu3 %v803_v3 }
  0xee   :  { %1080 = vmatpush.msra.mxu1 %v1761_v25  ;;  %1029 = vmatpush.msra.mxu0 %v842_v47  ;;  %v1122_v25 = vld [vmem:[%s2006_s4] ss:$0 sm:$0xff] }
  0xef   :  { %952 = vmatpush.msrb.mxu2 %v1888_v13  ;;  %1002 = vmatpush.msrb.mxu3 %v805_v62 }
  0xf0   :  { %1082 = vmatpush.msra.mxu1 %v1763_v39  ;;  %1033 = vmatpush.msra.mxu0 %v848_v28  ;;  %v1123_v28 = vld [vmem:[%s2007_s6] ss:$0 sm:$0xff] }
  0xf1   :  { %955 = vmatpush.msrb.mxu2 %v889_v0 }
  0xf2   :  { %1084 = vmatpush.msra.mxu1 %v1765_v7  ;;  %1037 = vmatpush.msra.mxu0 %v854_v33 }
  0xf3   :  { %958 = vmatpush.msrb.mxu2 %v895_v35 }
  0xf4   :  { %1086 = vmatpush.msra.mxu1 %v1776_v9  ;;  %1041 = vmatpush.msra.mxu0 %v860_v1 }
  0xf5   :  { %961 = vmatpush.msrb.mxu2 %v901_v61 }
  0xf6   :  { %1088 = vmatpush.msra.mxu1 %v1778_v43  ;;  %1045 = vmatpush.msra.mxu0 %v866_v55 }
  0xf7   :  { %964 = vmatpush.msrb.mxu2 %v907_v41 }
  0xf8   :  { %1090 = vmatpush.msra.mxu1 %v1780_v24  ;;  %1049 = vmatpush.msra.mxu0 %v872_v4 }
  0xfa   :  { %1092 = vmatpush.msra.mxu1 %v1798_v63  ;;  %1053 = vmatpush.msra.mxu0 %v878_v10 }
  0xfc   :  { %1094 = vmatpush.msra.mxu1 %v1809_v38  ;;  %1057 = vmatpush.msra.mxu0 %v884_v49 }
  0xfe   :  { %1096 = vmatpush.msra.mxu1 %v1855_v15  ;;  %1061 = vmatpush.msra.mxu0 %v890_v12 }
 0x100   :  { %1098 = vmatpush.msra.mxu1 %v1861_v36  ;;  %1065 = vmatpush.msra.mxu0 %v896_v42 }
 0x102   :  { %1100 = vmatpush.msra.mxu1 %v1863_v34  ;;  %1069 = vmatpush.msra.mxu0 %v902_v30 }
 0x104   :  { %1102 = vmatpush.msra.mxu1 %v1869_v22  ;;  %1073 = vmatpush.msra.mxu0 %v908_v21 }
 0x106   :  { %1104 = vmatpush.msra.mxu1 %v1935_v37 }
 0x108   :  { %1106 = vmatpush.msra.mxu1 %v1941_v31 }
 0x10a   :  { %1108 = vmatpush.msra.mxu1 %v803_v3 }
 0x10c   :  { %1110 = vmatpush.msra.mxu1 %v805_v62 }
 0x14f   :  { %v604_v24 = vpop.f32.mrf.mxu0 }
 0x151   :  { %v643_v11 = vpop.f32.mrf.mxu1 }
 0x153   :  { %v550_v39 = vpop.f32.mrf.mxu3 }
 0x15b   :  { %v449_v7 = vpop.f32.mrf.mxu2  ;;  %v749_v58 = vpop.f32.mrf.mxu3 }
 0x15c   :  { %v450_v9 = vadd.f32 %v1122_v25, %v449_v7 }
 0x15e   :  { %v551_v43 = vadd.f32 %v550_v39, %v450_v9 }
 0x160   :  { %v605_v57 = vadd.f32 %v604_v24, %v551_v43 }
 0x162   :  { %v644_v51 = vadd.f32 %v643_v11, %v605_v57 }
 0x163   :  { %v712_v63 = vpop.f32.mrf.mxu2 }
 0x164   :  { %v713_v17 = vadd.f32 %v712_v63, %v644_v51 }
 0x166   :  { %v750_v48 = vadd.f32 %v749_v58, %v713_v17 }
 0x168   :  { %vm752_vm1 = vcmp.gt.f32.partialorder %v750_v48, 0.0  ;;  %v753_v38 = vmul.f32 0.01, %v750_v48 }
 0x16a   :  { %v754_v14 = vsel %vm752_vm1, %v750_v48, %v753_v38 }
 0x16b   :  { %v807_v16 = vand.u32 4294901760, %v754_v14 }
 0x16d   :  { %913 = vmatmul.f32.vlgmr.msrb.gmra.mxu1 %v807_v16  ;;  %v808_v32 = vsub.f32 %v754_v14, %v807_v16 }
 0x16f   :  { %967 = vmatmul.f32.vlgmr.msrb.gmra.mxu2 %v808_v32  ;;  %v809_v26 = vand.u32 4294901760, %v808_v32 }
 0x171   :  { %1006 = vmatmul.f32.vlgmr.msrb.gmra.mxu3 %v809_v26  ;;  %v810_v47 = vsub.f32 %v808_v32, %v809_v26 }
 0x173   :  { %v811_v44 = vand.u32 4294901760, %v810_v47 }
 0x175   :  { %812 = vmatmul.f32.vlgmr.msrb.gmra.mxu0 %v811_v44  ;;  %1112 = vmatmul.f32.vlgmr.msra.gmra.mxu1 %v807_v16 }
 0x17d   :  { %1075 = vmatmul.f32.vlgmr.msra.gmra.mxu0 %v807_v16 }
 0x1ea   :  { %v914_v46 = vpop.f32.mrf.mxu1 }
 0x1f2   :  { %v813_v33 = vpop.f32.mrf.mxu0  ;;  %v968_v36 = vpop.f32.mrf.mxu2 }
 0x1f3   :  { %v814_v15 = vadd.f32 %v1123_v28, %v813_v33  ;;  %v1113_v59 = vpop.f32.mrf.mxu1 }
 0x1f4   :  { %v1007_v18 = vpop.f32.mrf.mxu3 }
 0x1f5   :  { %v915_v1 = vadd.f32 %v914_v46, %v814_v15 }
 0x1f7   :  { %v969_v34 = vadd.f32 %v968_v36, %v915_v1 }
 0x1f9   :  { %v1008_v22 = vadd.f32 %v1007_v18, %v969_v34 }
 0x1fa   :  { %v1076_v19 = vpop.f32.mrf.mxu0 }
 0x1fb   :  { %v1077_v55 = vadd.f32 %v1076_v19, %v1008_v22 }
 0x1fd   :  { %v1114_v4 = vadd.f32 %v1113_v59, %v1077_v55 }
 0x1ff   :  { %1116 = vst [vmem:[%s2008_s7] sm:$0xff] %v1114_v4 }

</bundles_post_ra>
